<compile_context>
chip_gen: v6e
topology: v6e:2x2x1
jax: 0.10.0
libtpu: 0.0.40
codegen_flags: <defaults>
</compile_context>

<pallas_src>
import functools
import math

import jax
import jax.numpy as jnp
from jax.experimental import pallas as pl
from jax.experimental.pallas import tpu as pltpu

LANE = 128  # TPU lane width; hidden / output feature dims are padded to this.


def qnetwork_kernel(x_ref, w1_ref, w2_ref, w3_ref, b_ref, o_ref):
    """Fused forward: relu(x@W1+b1) -> relu(.@W2+b2) -> .@W3+b3 (all lane-padded)."""
    x = x_ref[...]
    b1 = b_ref[0:1, :]
    b2 = b_ref[1:2, :]
    b3 = b_ref[2:3, :]
    h1 = jnp.maximum(
        jnp.dot(x, w1_ref[...], preferred_element_type=jnp.float32) + b1, 0.0)
    h2 = jnp.maximum(
        jnp.dot(h1, w2_ref[...], preferred_element_type=jnp.float32) + b2, 0.0)
    o_ref[...] = jnp.dot(h2, w3_ref[...], preferred_element_type=jnp.float32) + b3


def _pad_to(a, shape):
    return jnp.pad(a, [(0, t - s) for s, t in zip(a.shape, shape)])


@functools.partial(jax.jit, static_argnames=("block_b",))
def qnetwork_forward(x, w1, b1, w2, b2, w3, b3, *, block_b=256):
    B, S = x.shape
    H1 = w1.shape[1]
    H2 = w2.shape[1]
    A = w3.shape[1]
    HP = LANE  # padded lane width for hidden + output features

    # --- lane-dense, zero-padded parameters (padded rows/cols are inert: relu(0)=0) ---
    w1p = _pad_to(w1.astype(jnp.float32), (S, HP))
    w2p = _pad_to(w2.astype(jnp.float32), (HP, HP))
    w3p = _pad_to(w3.astype(jnp.float32), (HP, HP))
    b_packed = jnp.zeros((3, HP), jnp.float32)
    b_packed = b_packed.at[0, :H1].set(b1.reshape(-1))
    b_packed = b_packed.at[1, :H2].set(b2.reshape(-1))
    b_packed = b_packed.at[2, :A].set(b3.reshape(-1))

    # --- batch tiling: tile of at most block_b rows, rounded to sublane multiple of 8 ---
    tb = min(block_b, ((B + 7) // 8) * 8)
    bp = ((B + tb - 1) // tb) * tb          # padded batch so the grid divides evenly
    xp = _pad_to(x.astype(jnp.float32), (bp, S))

    out = pl.pallas_call(
        qnetwork_kernel,
        out_shape=jax.ShapeDtypeStruct((bp, HP), jnp.float32),
        grid_spec=pltpu.PrefetchScalarGridSpec(
            num_scalar_prefetch=0,
            grid=(bp // tb,),
            in_specs=[
                pl.BlockSpec((tb, S), lambda i: (i, 0)),    # x: tiled over batch
                pl.BlockSpec((S, HP), lambda i: (0, 0)),    # W1: VMEM-resident
                pl.BlockSpec((HP, HP), lambda i: (0, 0)),   # W2: VMEM-resident
                pl.BlockSpec((HP, HP), lambda i: (0, 0)),   # W3: VMEM-resident
                pl.BlockSpec((3, HP), lambda i: (0, 0)),    # packed biases
            ],
            out_specs=pl.BlockSpec((tb, HP), lambda i: (i, 0)),  # lane-dense output
        ),
        compiler_params=pltpu.CompilerParams(
            # batch tiles are independent -> shard across both TCs on v7x
            dimension_semantics=("parallel",),
        ),
    )(xp, w1p, w2p, w3p, b_packed)

    # Slice the lane/row padding back off (padded bias columns are zero anyway).
    return out[:B, :A]


def init_linear_params(key, in_features, out_features):
    """Deterministic init mimicking torch.nn.Linear default (uniform +-1/sqrt(fan_in))."""
    kw, kb = jax.random.split(key)
    bound = 1.0 / math.sqrt(in_features)
    # Stored as (in, out) so the kernel computes x @ W (== torch's x @ W.T + b).
    w = jax.random.uniform(kw, (in_features, out_features), jnp.float32, -bound, bound)
    b = jax.random.uniform(kb, (1, out_features), jnp.float32, -bound, bound)
    return w, b


if __name__ == "__main__":
    # Shapes consistent with the module: state_size=8, action_size=4, fc1=fc2=64, batch=8.
    state_size, action_size = 8, 4
    fc1_units, fc2_units = 64, 64
    batch = 8

    key = jax.random.PRNGKey(0)
    kx, k1, k2, k3 = jax.random.split(key, 4)

    x = jax.random.normal(kx, (batch, state_size), jnp.float32)
    w1, b1 = init_linear_params(k1, state_size, fc1_units)
    w2, b2 = init_linear_params(k2, fc1_units, fc2_units)
    w3, b3 = init_linear_params(k3, fc2_units, action_size)

    out = qnetwork_forward(x, w1, b1, w2, b2, w3, b3)
    out = jax.block_until_ready(out)

    # Pure-JAX reference check.
    h1 = jnp.maximum(x @ w1 + b1, 0.0)
    h2 = jnp.maximum(h1 @ w2 + b2, 0.0)
    ref = h2 @ w3 + b3
    assert out.shape == (batch, action_size)
    assert jnp.allclose(out, ref, atol=1e-5, rtol=1e-5)

    print("KERNEL_OK")
</pallas_src>

<mosaic_0001>
module attributes {stable_mosaic.version = 11 : i64} {
  func.func @qnetwork_kernel(%arg0: i32, %arg1: memref<8x8xf32, #tpu.memory_space<vmem>>, %arg2: memref<8x128xf32, #tpu.memory_space<vmem>>, %arg3: memref<128x128xf32, #tpu.memory_space<vmem>>, %arg4: memref<128x128xf32, #tpu.memory_space<vmem>>, %arg5: memref<3x128xf32, #tpu.memory_space<vmem>>, %arg6: memref<8x128xf32, #tpu.memory_space<vmem>>) attributes {dimension_semantics = [#tpu.dimension_semantics<parallel>], iteration_bounds = array<i64: 1>, scalar_prefetch = 0 : i64, scratch_operands = 0 : i64, tpu.core_type = #tpu.core_type<tc>, window_params = [{transform_indices = @transform_0, window_bounds = array<i64: 8, 8>}, {pipeline_mode = #tpu.pipeline_mode<synchronous>, transform_indices = @transform_1, window_bounds = array<i64: 8, 128>}, {pipeline_mode = #tpu.pipeline_mode<synchronous>, transform_indices = @transform_2, window_bounds = array<i64: 128, 128>}, {pipeline_mode = #tpu.pipeline_mode<synchronous>, transform_indices = @transform_3, window_bounds = array<i64: 128, 128>}, {pipeline_mode = #tpu.pipeline_mode<synchronous>, transform_indices = @transform_4, window_bounds = array<i64: 3, 128>}, {transform_indices = @transform_5, window_bounds = array<i64: 8, 128>}]} {
    %c0 = arith.constant 0 : index
    %c0_0 = arith.constant 0 : index
    %0 = vector.load %arg1[%c0, %c0_0] : memref<8x8xf32, #tpu.memory_space<vmem>>, vector<8x8xf32>
    %c0_1 = arith.constant 0 : index
    %c0_2 = arith.constant 0 : index
    %1 = vector.load %arg5[%c0_1, %c0_2] : memref<3x128xf32, #tpu.memory_space<vmem>>, vector<1x128xf32>
    %c1 = arith.constant 1 : index
    %c0_3 = arith.constant 0 : index
    %2 = vector.load %arg5[%c1, %c0_3] : memref<3x128xf32, #tpu.memory_space<vmem>>, vector<1x128xf32>
    %c2 = arith.constant 2 : index
    %c0_4 = arith.constant 0 : index
    %3 = vector.load %arg5[%c2, %c0_4] : memref<3x128xf32, #tpu.memory_space<vmem>>, vector<1x128xf32>
    %c0_5 = arith.constant 0 : index
    %c0_6 = arith.constant 0 : index
    %4 = vector.load %arg2[%c0_5, %c0_6] : memref<8x128xf32, #tpu.memory_space<vmem>>, vector<8x128xf32>
    %cst = arith.constant dense<0.000000e+00> : vector<8x128xf32>
    %5 = tpu.matmul %0, %4, %cst {dimension_numbers = #tpu.dot_dimension_numbers<[1], [0], [0], [1], [0, 0, 1, 1], [], []>} : vector<8x8xf32>, vector<8x128xf32>, vector<8x128xf32> -> vector<8x128xf32>
    %6 = vector.broadcast %1 : vector<1x128xf32> to vector<8x128xf32>
    %7 = arith.addf %5, %6 : vector<8x128xf32>
    %cst_7 = arith.constant 0.000000e+00 : f32
    %8 = vector.broadcast %cst_7 : f32 to vector<8x128xf32>
    %9 = arith.maximumf %7, %8 : vector<8x128xf32>
    %c0_8 = arith.constant 0 : index
    %c0_9 = arith.constant 0 : index
    %10 = vector.load %arg3[%c0_8, %c0_9] : memref<128x128xf32, #tpu.memory_space<vmem>>, vector<128x128xf32>
    %cst_10 = arith.constant dense<0.000000e+00> : vector<8x128xf32>
    %11 = tpu.matmul %9, %10, %cst_10 {dimension_numbers = #tpu.dot_dimension_numbers<[1], [0], [0], [1], [0, 0, 1, 1], [], []>} : vector<8x128xf32>, vector<128x128xf32>, vector<8x128xf32> -> vector<8x128xf32>
    %12 = vector.broadcast %2 : vector<1x128xf32> to vector<8x128xf32>
    %13 = arith.addf %11, %12 : vector<8x128xf32>
    %cst_11 = arith.constant 0.000000e+00 : f32
    %14 = vector.broadcast %cst_11 : f32 to vector<8x128xf32>
    %15 = arith.maximumf %13, %14 : vector<8x128xf32>
    %c0_12 = arith.constant 0 : index
    %c0_13 = arith.constant 0 : index
    %16 = vector.load %arg4[%c0_12, %c0_13] : memref<128x128xf32, #tpu.memory_space<vmem>>, vector<128x128xf32>
    %cst_14 = arith.constant dense<0.000000e+00> : vector<8x128xf32>
    %17 = tpu.matmul %15, %16, %cst_14 {dimension_numbers = #tpu.dot_dimension_numbers<[1], [0], [0], [1], [0, 0, 1, 1], [], []>} : vector<8x128xf32>, vector<128x128xf32>, vector<8x128xf32> -> vector<8x128xf32>
    %18 = vector.broadcast %3 : vector<1x128xf32> to vector<8x128xf32>
    %19 = arith.addf %17, %18 : vector<8x128xf32>
    %c0_15 = arith.constant 0 : index
    %c0_16 = arith.constant 0 : index
    %20 = vector.load %arg6[%c0_15, %c0_16] : memref<8x128xf32, #tpu.memory_space<vmem>>, vector<8x128xf32>
    tpu.vector_store %arg6[%c0_15, %c0_16], %19 {strides = array<i32>} : memref<8x128xf32, #tpu.memory_space<vmem>>, vector<8x128xf32>,
    return
  }
  func.func @transform_0(%arg0: i32) -> (i32, i32) {
    %c0_i32 = arith.constant 0 : i32
    %c0_i32_0 = arith.constant 0 : i32
    return %arg0, %c0_i32 : i32, i32
  }
  func.func @transform_1(%arg0: i32) -> (i32, i32) {
    %c0_i32 = arith.constant 0 : i32
    %c0_i32_0 = arith.constant 0 : i32
    %c0_i32_1 = arith.constant 0 : i32
    return %c0_i32, %c0_i32_0 : i32, i32
  }
  func.func @transform_2(%arg0: i32) -> (i32, i32) {
    %c0_i32 = arith.constant 0 : i32
    %c0_i32_0 = arith.constant 0 : i32
    %c0_i32_1 = arith.constant 0 : i32
    return %c0_i32, %c0_i32_0 : i32, i32
  }
  func.func @transform_3(%arg0: i32) -> (i32, i32) {
    %c0_i32 = arith.constant 0 : i32
    %c0_i32_0 = arith.constant 0 : i32
    %c0_i32_1 = arith.constant 0 : i32
    return %c0_i32, %c0_i32_0 : i32, i32
  }
  func.func @transform_4(%arg0: i32) -> (i32, i32) {
    %c0_i32 = arith.constant 0 : i32
    %c0_i32_0 = arith.constant 0 : i32
    %c0_i32_1 = arith.constant 0 : i32
    return %c0_i32, %c0_i32_0 : i32, i32
  }
  func.func @transform_5(%arg0: i32) -> (i32, i32) {
    %c0_i32 = arith.constant 0 : i32
    %c0_i32_0 = arith.constant 0 : i32
    return %arg0, %c0_i32 : i32, i32
  }
}

</mosaic_0001>

<bundles_post_ra>
// kernel: qnetwork_forward.1
= control target key start
LH: loop header
LB: loop body
LE: loop exit
PB: predicated region body
PF: predicated region fallthrough
CT: control target
= control target key end

     0   :  { %vm29_vm0 = vcmask 64512   ;;  %v407_v0 = vmov 0.0   ;;  %vm408_vm1 = vmmov 0   ;;  %s592_s1 = inlined_call_operand.vmem [shape: f32[8,128], index: 1, kind: input, shape index: {}]   ;;  %s593_s0 = inlined_call_operand.vmem [shape: f32[8,8], index: 0, kind: input, shape index: {}]   ;;  %s594_s2 = inlined_call_operand.vmem [shape: f32[128,128], index: 2, kind: input, shape index: {}]   ;;  %s595_s3 = inlined_call_operand.vmem [shape: f32[128,128], index: 3, kind: input, shape index: {}]   ;;  %s596_s4 = inlined_call_operand.vmem [shape: f32[3,128], index: 4, kind: input, shape index: {}]   ;;  %s597_s5 = inlined_call_operand.vmem [shape: f32[8,128], index: 5, kind: output, shape index: {}]  }
   0x1   :  { %330 = vmatprep.subr.mxu0 %v407_v0  ;;  %v24_v1 = vld [vmem:[%s592_s1] sm:$0xff]  ;;  %332 = vmatprep.mubr.msk.f32.mxu0 %vm408_vm1, %v407_v0  ;;  %v119_v3 = vld [vmem:[%s594_s2 + $0x78] sm:$0xff]  ;;  %v118_v4 = vld [vmem:[%s594_s2 + $0x70] sm:$0xff] }
   0x2   :  { %v20_v2 = vld [vmem:[%s593_s0] sm:$0xff]  ;;  %331 = vmatpush3.msra.mxu0 %v24_v1  ;;  %335 = vmatprep.subr.mxu1 %v407_v0  ;;  %v117_v5 = vld [vmem:[%s594_s2 + $0x68] sm:$0xff]  ;;  %v115_v7 = vld [vmem:[%s594_s2 + $0x58] sm:$0xff] }
   0x3   :  { %333 = vmatmul.mubr.msk.f32.vlgmr.msra.gmra.mxu0 %vm29_vm0, %v20_v2  ;;  %336 = vmatpush3.msra.mxu1 %v119_v3  ;;  %v116_v6 = vld [vmem:[%s594_s2 + $0x60] sm:$0xff]  ;;  %v114_v8 = vld [vmem:[%s594_s2 + $0x50] sm:$0xff]  ;;  %v113_v9 = vld [vmem:[%s594_s2 + $0x48] sm:$0xff] }
   0x4   :  { %337 = vmatprep.subr.mxu1 %v407_v0  ;;  %367 = vmatprep.mubr.msk.f32.mxu1 %vm408_vm1, %v407_v0  ;;  %v112_v10 = vld [vmem:[%s594_s2 + $0x40] sm:$0xff]  ;;  %v111_v11 = vld [vmem:[%s594_s2 + $0x38] sm:$0xff]  ;;  %v110_v12 = vld [vmem:[%s594_s2 + $0x30] sm:$0xff] }
   0x5   :  { %338 = vmatpush3.msra.mxu1 %v118_v4  ;;  %370 = vmatprep.subr.mxu0 %v407_v0  ;;  %v109_v13 = vld [vmem:[%s594_s2 + $0x28] sm:$0xff]  ;;  %v108_v14 = vld [vmem:[%s594_s2 + $0x20] sm:$0xff]  ;;  %v107_v15 = vld [vmem:[%s594_s2 + $0x18] sm:$0xff] }
   0x6   :  { %339 = vmatprep.subr.mxu1 %v407_v0  ;;  %402 = vmatprep.mubr.msk.f32.mxu0 %vm408_vm1, %v407_v0  ;;  %v106_v16 = vld [vmem:[%s594_s2 + $0x10] sm:$0xff]  ;;  %v105_v17 = vld [vmem:[%s594_s2 + $0x8] sm:$0xff]  ;;  %v104_v18 = vld [vmem:[%s594_s2] sm:$0xff] }
   0x7   :  { %340 = vmatpush3.msra.mxu1 %v117_v5  ;;  %v210_v19 = vld [vmem:[%s595_s3 + $0x78] sm:$0xff]  ;;  %v209_v20 = vld [vmem:[%s595_s3 + $0x70] sm:$0xff]  ;;  %v208_v21 = vld [vmem:[%s595_s3 + $0x68] sm:$0xff] }
   0x8   :  { %341 = vmatprep.subr.mxu1 %v407_v0  ;;  %371 = vmatpush3.msra.mxu0 %v210_v19  ;;  %v207_v22 = vld [vmem:[%s595_s3 + $0x60] sm:$0xff]  ;;  %v206_v23 = vld [vmem:[%s595_s3 + $0x58] sm:$0xff]  ;;  %v205_v24 = vld [vmem:[%s595_s3 + $0x50] sm:$0xff] }
   0x9   :  { %342 = vmatpush3.msra.mxu1 %v116_v6  ;;  %372 = vmatprep.subr.mxu0 %v407_v0  ;;  %v204_v25 = vld [vmem:[%s595_s3 + $0x48] sm:$0xff]  ;;  %v203_v26 = vld [vmem:[%s595_s3 + $0x40] sm:$0xff]  ;;  %v202_v27 = vld [vmem:[%s595_s3 + $0x38] sm:$0xff] }
   0xa   :  { %343 = vmatprep.subr.mxu1 %v407_v0  ;;  %373 = vmatpush3.msra.mxu0 %v209_v20  ;;  %v201_v28 = vld [vmem:[%s595_s3 + $0x30] sm:$0xff]  ;;  %v200_v29 = vld [vmem:[%s595_s3 + $0x28] sm:$0xff]  ;;  %v199_v30 = vld [vmem:[%s595_s3 + $0x20] sm:$0xff] }
   0xb   :  { %344 = vmatpush3.msra.mxu1 %v115_v7  ;;  %374 = vmatprep.subr.mxu0 %v407_v0  ;;  %v198_v31 = vld [vmem:[%s595_s3 + $0x18] sm:$0xff]  ;;  %v290_v32 = vld [vmem:[%s596_s4] ss:$0 sm:$0xff]  ;;  %v197_v37 = vld [vmem:[%s595_s3 + $0x10] sm:$0xff] }
   0xc   :  { %345 = vmatprep.subr.mxu1 %v407_v0  ;;  %375 = vmatpush3.msra.mxu0 %v208_v21  ;;  %v196_v38 = vld [vmem:[%s595_s3 + $0x8] sm:$0xff]  ;;  %v195_v39 = vld [vmem:[%s595_s3] sm:$0xff] }
   0xd   :  { %346 = vmatpush3.msra.mxu1 %v114_v8  ;;  %376 = vmatprep.subr.mxu0 %v407_v0  ;;  %v292_v40 = vld [vmem:[%s596_s4 + $0x1] ss:$0 sm:$0xff]  ;;  %v293_v45 = vld [vmem:[%s596_s4 + $0x2] ss:$0 sm:$0xff] }
   0xe   :  { %347 = vmatprep.subr.mxu1 %v407_v0  ;;  %377 = vmatpush3.msra.mxu0 %v207_v22 }
   0xf   :  { %348 = vmatpush3.msra.mxu1 %v113_v9  ;;  %378 = vmatprep.subr.mxu0 %v407_v0 }
  0x10   :  { %349 = vmatprep.subr.mxu1 %v407_v0  ;;  %379 = vmatpush3.msra.mxu0 %v206_v23 }
  0x11   :  { %350 = vmatpush3.msra.mxu1 %v112_v10  ;;  %380 = vmatprep.subr.mxu0 %v407_v0 }
  0x12   :  { %351 = vmatprep.subr.mxu1 %v407_v0  ;;  %381 = vmatpush3.msra.mxu0 %v205_v24 }
  0x13   :  { %352 = vmatpush3.msra.mxu1 %v111_v11  ;;  %382 = vmatprep.subr.mxu0 %v407_v0 }
  0x14   :  { %353 = vmatprep.subr.mxu1 %v407_v0  ;;  %383 = vmatpush3.msra.mxu0 %v204_v25 }
  0x15   :  { %354 = vmatpush3.msra.mxu1 %v110_v12  ;;  %384 = vmatprep.subr.mxu0 %v407_v0 }
  0x16   :  { %355 = vmatprep.subr.mxu1 %v407_v0  ;;  %385 = vmatpush3.msra.mxu0 %v203_v26 }
  0x17   :  { %356 = vmatpush3.msra.mxu1 %v109_v13  ;;  %386 = vmatprep.subr.mxu0 %v407_v0 }
  0x18   :  { %357 = vmatprep.subr.mxu1 %v407_v0  ;;  %387 = vmatpush3.msra.mxu0 %v202_v27 }
  0x19   :  { %358 = vmatpush3.msra.mxu1 %v108_v14  ;;  %388 = vmatprep.subr.mxu0 %v407_v0 }
  0x1a   :  { %359 = vmatprep.subr.mxu1 %v407_v0  ;;  %389 = vmatpush3.msra.mxu0 %v201_v28 }
  0x1b   :  { %360 = vmatpush3.msra.mxu1 %v107_v15  ;;  %390 = vmatprep.subr.mxu0 %v407_v0 }
  0x1c   :  { %361 = vmatprep.subr.mxu1 %v407_v0  ;;  %391 = vmatpush3.msra.mxu0 %v200_v29 }
  0x1d   :  { %362 = vmatpush3.msra.mxu1 %v106_v16  ;;  %392 = vmatprep.subr.mxu0 %v407_v0 }
  0x1e   :  { %363 = vmatprep.subr.mxu1 %v407_v0  ;;  %393 = vmatpush3.msra.mxu0 %v199_v30 }
  0x1f   :  { %364 = vmatpush3.msra.mxu1 %v105_v17  ;;  %394 = vmatprep.subr.mxu0 %v407_v0 }
  0x20   :  { %365 = vmatprep.subr.mxu1 %v407_v0  ;;  %395 = vmatpush3.msra.mxu0 %v198_v31 }
  0x21   :  { %366 = vmatpush3.msra.mxu1 %v104_v18  ;;  %396 = vmatprep.subr.mxu0 %v407_v0 }
  0x22   :  { %397 = vmatpush3.msra.mxu0 %v197_v37 }
  0x23   :  { %398 = vmatprep.subr.mxu0 %v407_v0 }
  0x24   :  { %399 = vmatpush3.msra.mxu0 %v196_v38 }
  0x25   :  { %400 = vmatprep.subr.mxu0 %v407_v0 }
  0x26   :  { %401 = vmatpush3.msra.mxu0 %v195_v39 }
  0xc3   :  { %v99_v33 = vpop.f32.mrf.mxu0 }
  0xc4   :  { %v100_v34 = vadd.f32 %v290_v32, %v99_v33 }
  0xc5   :  { %v334_v35 = vpop.f32.mrf.mxu0 }
  0xc6   :  { %v103_v36 = vmax.f32 %v100_v34, 0.0 }
  0xc8   :  { %368 = vmatmul.mubr.f32.vlgmr.msra.gmra.mxu1 %v103_v36 }
 0x188   :  { %v190_v41 = vpop.f32.mrf.mxu1 }
 0x189   :  { %v191_v42 = vadd.f32 %v292_v40, %v190_v41 }
 0x18a   :  { %v369_v43 = vpop.f32.mrf.mxu1 }
 0x18b   :  { %v194_v44 = vmax.f32 %v191_v42, 0.0 }
 0x18d   :  { %403 = vmatmul.mubr.f32.vlgmr.msra.gmra.mxu0 %v194_v44 }
 0x24d   :  { %v281_v46 = vpop.f32.mrf.mxu0 }
 0x24e   :  { %v282_v47 = vadd.f32 %v293_v45, %v281_v46 }
 0x24f   :  { %v404_v48 = vpop.f32.mrf.mxu0 }
 0x250   :  { %285 = vst [vmem:[%s597_s5] sm:$0xff] %v282_v47 }

</bundles_post_ra>
